<compile_context>
chip_gen: v6e
topology: v6e:2x2x1
jax: 0.10.0
libtpu: 0.0.40
codegen_flags: <defaults>
</compile_context>

<pallas_src>
import math

import jax
import jax.numpy as jnp
from jax.experimental import pallas as pl
from jax.experimental.pallas import tpu as pltpu

_LANE = 128
_SUB = 8


def _lif_kernel(thresh, tau, T):
    """Kernel over one (T, TR, 128) block; mem carried in VMEM scratch."""

    def kernel(x_ref, o_ref, mem_ref):
        # t = 0 : mem starts at zero, so mem = x[0].
        mem0 = x_ref[0].astype(jnp.float32)
        spike0 = mem0 >= thresh
        mem_ref[...] = jnp.where(spike0, 0.0, mem0)
        o_ref[0] = spike0.astype(o_ref.dtype)

        def body(t, carry):
            m = mem_ref[...]
            if tau != 1.0:           # trace-time constant; skip mul when tau == 1
                m = m * tau
            m = m + x_ref[t].astype(jnp.float32)
            spike = m >= thresh
            mem_ref[...] = jnp.where(spike, 0.0, m)
            o_ref[t] = spike.astype(o_ref.dtype)
            return carry

        jax.lax.fori_loop(1, T, body, 0, unroll=True)

    return kernel


def lif_spike(x, T, thresh=1.0, tau=1.0, gama=1.0):
    """Forward of LIFSpike (mode='bptt', T>0).  x: (T*B, C, H, W)."""
    del gama  # only affects the backward surrogate gradient
    orig_shape = x.shape
    orig_dtype = x.dtype
    assert orig_shape[0] % T == 0, "leading dim must be divisible by T"

    n_per_t = math.prod(orig_shape) // T
    xf = x.reshape(T, n_per_t)

    # Pad only if the flat dim is not a multiple of the 128-lane width.
    pad = (-n_per_t) % _LANE
    if pad:
        xf = jnp.pad(xf, ((0, 0), (0, pad)))
    n_pad = n_per_t + pad
    R = n_pad // _LANE
    xf = xf.reshape(T, R, _LANE)

    in_size = jnp.dtype(xf.dtype).itemsize
    out_dtype = orig_dtype
    out_size = jnp.dtype(out_dtype).itemsize

    # VMEM cost per row of 128 lanes:
    #   2x double-buffered input + 2x double-buffered output (T rows each)
    #   + 1x f32 membrane scratch row.
    bytes_per_row = _LANE * (2 * T * in_size + 2 * T * out_size + 4)

    # Per-generation VMEM capacity (64 MiB/TC on v7x, 128 MiB on v5e/v6e).
    try:
        vmem_cap = int(pltpu.get_tpu_info().vmem_capacity_bytes)
    except Exception:  # conservative fallback (v7x-sized)
        vmem_cap = 64 * 1024 * 1024
    budget = int(vmem_cap * 0.45)

    # Largest row tile (multiple of 8) that fits the budget; ragged last block
    # is handled by the cdiv grid + masking, so TR need not divide R.
    if R <= _SUB:
        TR = R
    else:
        TR = min(R, max(1, budget // bytes_per_row), 8192)
        TR = max(_SUB, (TR // _SUB) * _SUB)

    num_blocks = pl.cdiv(R, TR)

    vmem_needed = TR * bytes_per_row
    vmem_limit = min(int(vmem_cap * 0.9), vmem_needed + (8 << 20))
    vmem_limit = max(vmem_limit, 16 << 20)

    n_elems = T * n_pad
    cost = pl.CostEstimate(
        flops=4 * n_elems,                                # mul, add, cmp, select
        transcendentals=0,
        bytes_accessed=n_elems * (in_size + out_size),
    )

    out = pl.pallas_call(
        _lif_kernel(float(thresh), float(tau), T),
        out_shape=jax.ShapeDtypeStruct((T, R, _LANE), out_dtype),
        grid_spec=pltpu.PrefetchScalarGridSpec(
            num_scalar_prefetch=0,
            grid=(num_blocks,),
            in_specs=[pl.BlockSpec((T, TR, _LANE), lambda r: (0, r, 0))],
            out_specs=pl.BlockSpec((T, TR, _LANE), lambda r: (0, r, 0)),
            scratch_shapes=[pltpu.VMEM((TR, _LANE), jnp.float32)],
        ),
        compiler_params=pltpu.CompilerParams(
            # row blocks are fully independent (mem carry is inside the block)
            dimension_semantics=("parallel",),
            vmem_limit_bytes=vmem_limit,
        ),
        cost_estimate=cost,
    )(xf)

    out = out.reshape(T, n_pad)
    if pad:
        out = out[:, :n_per_t]
    return out.reshape(orig_shape).astype(orig_dtype)


def lif_spike_ref(x, T, thresh=1.0, tau=1.0):
    """Pure-JAX reference of the PyTorch forward loop."""
    shape = x.shape
    xt = x.reshape((T, shape[0] // T) + shape[1:]).astype(jnp.float32)
    mem = jnp.zeros_like(xt[0])
    spikes = []
    for _ in range(T):
        pass
    mem = jnp.zeros_like(xt[0])
    for t in range(T):
        mem = mem * tau + xt[t]
        spike = (mem - thresh >= 0.0).astype(jnp.float32)
        mem = (1.0 - spike) * mem
        spikes.append(spike)
    out = jnp.stack(spikes, axis=0)
    return out.reshape(shape).astype(x.dtype)


if __name__ == "__main__":
    T = 4
    B, C, H, W = 2, 4, 16, 16
    key = jax.random.PRNGKey(0)
    # Module input is the merged (T*B, C, H, W) tensor.
    x = jax.random.normal(key, (T * B, C, H, W), dtype=jnp.float32) * 1.5

    y = lif_spike(x, T=T, thresh=1.0, tau=1.0, gama=1.0)
    y = jax.block_until_ready(y)

    y_ref = lif_spike_ref(x, T=T, thresh=1.0, tau=1.0)
    assert y.shape == x.shape and y.dtype == x.dtype
    assert jnp.allclose(y, y_ref), "mismatch vs reference"
    print("KERNEL_OK")
</pallas_src>

<mosaic_0001>
module attributes {stable_mosaic.version = 11 : i64} {
  func.func @kernel(%arg0: i32, %arg1: memref<4x16x128xf32, #tpu.memory_space<vmem>>, %arg2: memref<4x16x128xf32, #tpu.memory_space<vmem>>, %arg3: memref<16x128xf32, #tpu.memory_space<vmem>>) attributes {dimension_semantics = [#tpu.dimension_semantics<parallel>], iteration_bounds = array<i64: 1>, scalar_prefetch = 0 : i64, scratch_operands = 1 : i64, tpu.core_type = #tpu.core_type<tc>, window_params = [{transform_indices = @transform_0, window_bounds = array<i64: 4, 16, 128>}, {transform_indices = @transform_1, window_bounds = array<i64: 4, 16, 128>}]} {
    %c0 = arith.constant 0 : index
    %c0_0 = arith.constant 0 : index
    %c0_1 = arith.constant 0 : index
    %0 = vector.load %arg1[%c0, %c0_0, %c0_1] : memref<4x16x128xf32, #tpu.memory_space<vmem>>, vector<1x16x128xf32>
    %1 = vector.shape_cast %0 : vector<1x16x128xf32> to vector<16x128xf32>
    %cst = arith.constant 1.000000e+00 : f32
    %2 = vector.broadcast %cst : f32 to vector<16x128xf32>
    %3 = arith.cmpf oge, %1, %2 : vector<16x128xf32>
    %cst_2 = arith.constant 0.000000e+00 : f32
    %4 = vector.broadcast %cst_2 : f32 to vector<16x128xf32>
    %5 = arith.select %3, %4, %1 : vector<16x128xi1>, vector<16x128xf32>
    %c0_3 = arith.constant 0 : index
    %c0_4 = arith.constant 0 : index
    %6 = vector.load %arg3[%c0_3, %c0_4] : memref<16x128xf32, #tpu.memory_space<vmem>>, vector<16x128xf32>
    tpu.vector_store %arg3[%c0_3, %c0_4], %5 {strides = array<i32>} : memref<16x128xf32, #tpu.memory_space<vmem>>, vector<16x128xf32>,
    %7 = arith.extui %3 : vector<16x128xi1> to vector<16x128xi32>
    %8 = arith.sitofp %7 : vector<16x128xi32> to vector<16x128xf32>
    %c0_5 = arith.constant 0 : index
    %c0_6 = arith.constant 0 : index
    %c0_7 = arith.constant 0 : index
    %9 = vector.load %arg2[%c0_5, %c0_6, %c0_7] : memref<4x16x128xf32, #tpu.memory_space<vmem>>, vector<1x16x128xf32>
    %10 = vector.shape_cast %9 : vector<1x16x128xf32> to vector<16x128xf32>
    %11 = vector.shape_cast %8 : vector<16x128xf32> to vector<1x16x128xf32>
    tpu.vector_store %arg2[%c0_5, %c0_6, %c0_7], %11 {strides = array<i32>} : memref<4x16x128xf32, #tpu.memory_space<vmem>>, vector<1x16x128xf32>,
    %c1_i32 = arith.constant 1 : i32
    %c0_8 = arith.constant 0 : index
    %c0_9 = arith.constant 0 : index
    %12 = vector.load %arg3[%c0_8, %c0_9] : memref<16x128xf32, #tpu.memory_space<vmem>>, vector<16x128xf32>
    %13 = arith.index_cast %c1_i32 : i32 to index
    %c0_10 = arith.constant 0 : index
    %c0_11 = arith.constant 0 : index
    %14 = vector.load %arg1[%13, %c0_10, %c0_11] : memref<4x16x128xf32, #tpu.memory_space<vmem>>, vector<1x16x128xf32>
    %15 = vector.shape_cast %14 : vector<1x16x128xf32> to vector<16x128xf32>
    %16 = arith.addf %12, %15 : vector<16x128xf32>
    %cst_12 = arith.constant 1.000000e+00 : f32
    %17 = vector.broadcast %cst_12 : f32 to vector<16x128xf32>
    %18 = arith.cmpf oge, %16, %17 : vector<16x128xf32>
    %cst_13 = arith.constant 0.000000e+00 : f32
    %19 = vector.broadcast %cst_13 : f32 to vector<16x128xf32>
    %20 = arith.select %18, %19, %16 : vector<16x128xi1>, vector<16x128xf32>
    %c0_14 = arith.constant 0 : index
    %c0_15 = arith.constant 0 : index
    %21 = vector.load %arg3[%c0_14, %c0_15] : memref<16x128xf32, #tpu.memory_space<vmem>>, vector<16x128xf32>
    tpu.vector_store %arg3[%c0_14, %c0_15], %20 {strides = array<i32>} : memref<16x128xf32, #tpu.memory_space<vmem>>, vector<16x128xf32>,
    %22 = arith.extui %18 : vector<16x128xi1> to vector<16x128xi32>
    %23 = arith.sitofp %22 : vector<16x128xi32> to vector<16x128xf32>
    %24 = arith.index_cast %c1_i32 : i32 to index
    %c0_16 = arith.constant 0 : index
    %c0_17 = arith.constant 0 : index
    %25 = vector.load %arg2[%24, %c0_16, %c0_17] : memref<4x16x128xf32, #tpu.memory_space<vmem>>, vector<1x16x128xf32>
    %26 = vector.shape_cast %25 : vector<1x16x128xf32> to vector<16x128xf32>
    %27 = vector.shape_cast %23 : vector<16x128xf32> to vector<1x16x128xf32>
    tpu.vector_store %arg2[%24, %c0_16, %c0_17], %27 {strides = array<i32>} : memref<4x16x128xf32, #tpu.memory_space<vmem>>, vector<1x16x128xf32>,
    %c2_i32 = arith.constant 2 : i32
    %c0_18 = arith.constant 0 : index
    %c0_19 = arith.constant 0 : index
    %28 = vector.load %arg3[%c0_18, %c0_19] : memref<16x128xf32, #tpu.memory_space<vmem>>, vector<16x128xf32>
    %29 = arith.index_cast %c2_i32 : i32 to index
    %c0_20 = arith.constant 0 : index
    %c0_21 = arith.constant 0 : index
    %30 = vector.load %arg1[%29, %c0_20, %c0_21] : memref<4x16x128xf32, #tpu.memory_space<vmem>>, vector<1x16x128xf32>
    %31 = vector.shape_cast %30 : vector<1x16x128xf32> to vector<16x128xf32>
    %32 = arith.addf %28, %31 : vector<16x128xf32>
    %cst_22 = arith.constant 1.000000e+00 : f32
    %33 = vector.broadcast %cst_22 : f32 to vector<16x128xf32>
    %34 = arith.cmpf oge, %32, %33 : vector<16x128xf32>
    %cst_23 = arith.constant 0.000000e+00 : f32
    %35 = vector.broadcast %cst_23 : f32 to vector<16x128xf32>
    %36 = arith.select %34, %35, %32 : vector<16x128xi1>, vector<16x128xf32>
    %c0_24 = arith.constant 0 : index
    %c0_25 = arith.constant 0 : index
    %37 = vector.load %arg3[%c0_24, %c0_25] : memref<16x128xf32, #tpu.memory_space<vmem>>, vector<16x128xf32>
    tpu.vector_store %arg3[%c0_24, %c0_25], %36 {strides = array<i32>} : memref<16x128xf32, #tpu.memory_space<vmem>>, vector<16x128xf32>,
    %38 = arith.extui %34 : vector<16x128xi1> to vector<16x128xi32>
    %39 = arith.sitofp %38 : vector<16x128xi32> to vector<16x128xf32>
    %40 = arith.index_cast %c2_i32 : i32 to index
    %c0_26 = arith.constant 0 : index
    %c0_27 = arith.constant 0 : index
    %41 = vector.load %arg2[%40, %c0_26, %c0_27] : memref<4x16x128xf32, #tpu.memory_space<vmem>>, vector<1x16x128xf32>
    %42 = vector.shape_cast %41 : vector<1x16x128xf32> to vector<16x128xf32>
    %43 = vector.shape_cast %39 : vector<16x128xf32> to vector<1x16x128xf32>
    tpu.vector_store %arg2[%40, %c0_26, %c0_27], %43 {strides = array<i32>} : memref<4x16x128xf32, #tpu.memory_space<vmem>>, vector<1x16x128xf32>,
    %c3_i32 = arith.constant 3 : i32
    %c0_28 = arith.constant 0 : index
    %c0_29 = arith.constant 0 : index
    %44 = vector.load %arg3[%c0_28, %c0_29] : memref<16x128xf32, #tpu.memory_space<vmem>>, vector<16x128xf32>
    %45 = arith.index_cast %c3_i32 : i32 to index
    %c0_30 = arith.constant 0 : index
    %c0_31 = arith.constant 0 : index
    %46 = vector.load %arg1[%45, %c0_30, %c0_31] : memref<4x16x128xf32, #tpu.memory_space<vmem>>, vector<1x16x128xf32>
    %47 = vector.shape_cast %46 : vector<1x16x128xf32> to vector<16x128xf32>
    %48 = arith.addf %44, %47 : vector<16x128xf32>
    %cst_32 = arith.constant 1.000000e+00 : f32
    %49 = vector.broadcast %cst_32 : f32 to vector<16x128xf32>
    %50 = arith.cmpf oge, %48, %49 : vector<16x128xf32>
    %cst_33 = arith.constant 0.000000e+00 : f32
    %51 = vector.broadcast %cst_33 : f32 to vector<16x128xf32>
    %52 = arith.select %50, %51, %48 : vector<16x128xi1>, vector<16x128xf32>
    %c0_34 = arith.constant 0 : index
    %c0_35 = arith.constant 0 : index
    %53 = vector.load %arg3[%c0_34, %c0_35] : memref<16x128xf32, #tpu.memory_space<vmem>>, vector<16x128xf32>
    tpu.vector_store %arg3[%c0_34, %c0_35], %52 {strides = array<i32>} : memref<16x128xf32, #tpu.memory_space<vmem>>, vector<16x128xf32>,
    %54 = arith.extui %50 : vector<16x128xi1> to vector<16x128xi32>
    %55 = arith.sitofp %54 : vector<16x128xi32> to vector<16x128xf32>
    %56 = arith.index_cast %c3_i32 : i32 to index
    %c0_36 = arith.constant 0 : index
    %c0_37 = arith.constant 0 : index
    %57 = vector.load %arg2[%56, %c0_36, %c0_37] : memref<4x16x128xf32, #tpu.memory_space<vmem>>, vector<1x16x128xf32>
    %58 = vector.shape_cast %57 : vector<1x16x128xf32> to vector<16x128xf32>
    %59 = vector.shape_cast %55 : vector<16x128xf32> to vector<1x16x128xf32>
    tpu.vector_store %arg2[%56, %c0_36, %c0_37], %59 {strides = array<i32>} : memref<4x16x128xf32, #tpu.memory_space<vmem>>, vector<1x16x128xf32>,
    %c3_i32_38 = arith.constant 3 : i32
    return
  }
  func.func @transform_0(%arg0: i32) -> (i32, i32, i32) {
    %c0_i32 = arith.constant 0 : i32
    %c0_i32_0 = arith.constant 0 : i32
    %c0_i32_1 = arith.constant 0 : i32
    return %c0_i32, %arg0, %c0_i32_0 : i32, i32, i32
  }
  func.func @transform_1(%arg0: i32) -> (i32, i32, i32) {
    %c0_i32 = arith.constant 0 : i32
    %c0_i32_0 = arith.constant 0 : i32
    %c0_i32_1 = arith.constant 0 : i32
    return %c0_i32, %arg0, %c0_i32_0 : i32, i32, i32
  }
}

</mosaic_0001>

<bundles_post_ra>
// kernel: tpu_custom_call.1
= control target key start
LH: loop header
LB: loop body
LE: loop exit
PB: predicated region body
PF: predicated region fallthrough
CT: control target
= control target key end

     0   :  { %6 = vsyncpa [#allocation4], 0  ;;  %s198_s0 = inlined_call_operand.hbm [shape: f32[4,16,128], index: 0, kind: input, shape index: {}]   ;;  %s199_s1 = inlined_call_operand.hbm [shape: f32[4,16,128], index: 1, kind: output, shape index: {}]  }
   0x1   :  { %7 = vsyncpa [#allocation5], 0  ;;  %s171_s6 = smov [#allocation3]  }
   0x2   :  { %s13_s7 = sshll.u32 %s171_s6, 4  ;;  %s14_s7 = int_to_ptr.vmem [resolvable:$true] %s13_s7 }
   0x3   :  { %s135_s8 = scalar_lea.vmem %s14_s7, 1024  ;;  %p140_p1 = scmp.lt.s32.totalorder %s14_s7, %s14_s7 }
   0x4   :  { %p136_p0 = scmp.ne.s32.totalorder %s14_s7, %s135_s8  ;;  %p141_p2 = scmp.lt.s32.totalorder %s135_s8, %s135_s8 }
   0x6   :  { %p142_p3 = por %p141_p2, %p140_p1 }
   0x8   :  { %p143_p4 = pnand %p142_p3, %p136_p0 }
   0xa   :  { %146 = shalt.err (!%p143_p4)
}
   0xb   :  { %s172_s9 = smov 128   ;;  %s173_s10 = smov 8  }
   0xc   :  { %19 = dma.hbm_to_vmem [thread:$0]  %s198_s0, 1024, %s14_s7, [#allocation4], %s172_s9, %s172_s9, %s173_s10  }
   0xd   :  { %167 = dma.done.wait [#allocation4], 1024  }
   0xe   :  { %168 = vsyncadd [#allocation4], 4294966272  ;;  %v23_v0 = vld [vmem:[#allocation3] sm:$0xff]  ;;  %v24_v1 = vld [vmem:[#allocation3 + $0x8] sm:$0xff]  ;;  %v174_v5 = vmov 0.0   ;;  %s175_s0 = smov [#allocation6]  }
   0xf   :  { %v40_v2 = vld [vmem:[#allocation3 + $0x10] sm:$0xff]  ;;  %vm25_vm0 = vcmp.ge.f32.partialorder %v23_v0, 1.0  ;;  %vm26_vm1 = vcmp.ge.f32.partialorder %v24_v1, 1.0  ;;  %v41_v3 = vld [vmem:[#allocation3 + $0x18] sm:$0xff]  ;;  %v60_v11 = vld [vmem:[#allocation3 + $0x20] sm:$0xff]  ;;  %s102_s13 = sshll.u32 %s175_s0, 4  ;;  %s103_s13 = int_to_ptr.vmem [resolvable:$true] %s102_s13 }
  0x10   :  { %v27_v4 = vsel %vm25_vm0, 0.0, %v23_v0  ;;  %v114_v6 = vsel %vm25_vm0, 1.0, %v174_v5  ;;  %v28_v7 = vsel %vm26_vm1, 0.0, %v24_v1  ;;  %v115_v8 = vsel %vm26_vm1, 1.0, %v174_v5  ;;  %v61_v12 = vld [vmem:[#allocation3 + $0x28] sm:$0xff]  ;;  %v80_v19 = vld [vmem:[#allocation3 + $0x30] sm:$0xff]  ;;  %p152_p6 = scmp.lt.s32.totalorder %s103_s13, %s103_s13 }
  0x11   :  { %35 = vst [vmem:[#allocation6] sm:$0xff] %v114_v6  ;;  %36 = vst [vmem:[#allocation6 + $0x8] sm:$0xff] %v115_v8  ;;  %v42_v9 = vadd.f32 %v40_v2, %v27_v4  ;;  %v43_v10 = vadd.f32 %v41_v3, %v28_v7  ;;  %v81_v20 = vld [vmem:[#allocation3 + $0x38] sm:$0xff]  ;;  %s147_s14 = scalar_lea.vmem %s103_s13, 1024 }
  0x12   :  { %p148_p5 = scmp.ne.s32.totalorder %s103_s13, %s147_s14  ;;  %p153_p7 = scmp.lt.s32.totalorder %s147_s14, %s147_s14 }
  0x13   :  { %vm44_vm2 = vcmp.ge.f32.partialorder %v42_v9, 1.0  ;;  %vm45_vm3 = vcmp.ge.f32.partialorder %v43_v10, 1.0 }
  0x14   :  { %v46_v13 = vsel %vm44_vm2, 0.0, %v42_v9  ;;  %v116_v14 = vsel %vm44_vm2, 1.0, %v174_v5  ;;  %v47_v15 = vsel %vm45_vm3, 0.0, %v43_v10  ;;  %v117_v16 = vsel %vm45_vm3, 1.0, %v174_v5  ;;  %p154_p8 = por %p153_p7, %p152_p6 }
  0x15   :  { %55 = vst [vmem:[#allocation6 + $0x10] sm:$0xff] %v116_v14  ;;  %56 = vst [vmem:[#allocation6 + $0x18] sm:$0xff] %v117_v16  ;;  %v62_v17 = vadd.f32 %v60_v11, %v46_v13  ;;  %v63_v18 = vadd.f32 %v61_v12, %v47_v15 }
  0x16   :  { %p155_p9 = pnand %p154_p8, %p148_p5 }
  0x17   :  { %vm64_vm4 = vcmp.ge.f32.partialorder %v62_v17, 1.0  ;;  %vm65_vm5 = vcmp.ge.f32.partialorder %v63_v18, 1.0 }
  0x18   :  { %v66_v21 = vsel %vm64_vm4, 0.0, %v62_v17  ;;  %v118_v22 = vsel %vm64_vm4, 1.0, %v174_v5  ;;  %v67_v23 = vsel %vm65_vm5, 0.0, %v63_v18  ;;  %v119_v24 = vsel %vm65_vm5, 1.0, %v174_v5 }
  0x19   :  { %75 = vst [vmem:[#allocation6 + $0x20] sm:$0xff] %v118_v22  ;;  %76 = vst [vmem:[#allocation6 + $0x28] sm:$0xff] %v119_v24  ;;  %v82_v25 = vadd.f32 %v80_v19, %v66_v21  ;;  %v83_v26 = vadd.f32 %v81_v20, %v67_v23 }
  0x1b   :  { %vm84_vm6 = vcmp.ge.f32.partialorder %v82_v25, 1.0  ;;  %vm85_vm7 = vcmp.ge.f32.partialorder %v83_v26, 1.0 }
  0x1c   :  { %v120_v27 = vsel %vm84_vm6, 1.0, %v174_v5  ;;  %v121_v28 = vsel %vm85_vm7, 1.0, %v174_v5 }
  0x1d   :  { %95 = vst [vmem:[#allocation6 + $0x30] sm:$0xff] %v120_v27  ;;  %96 = vst [vmem:[#allocation6 + $0x38] sm:$0xff] %v121_v28 }
  0x1e   :  { %158 = shalt.err (!%p155_p9)
}
  0x1f   :  { %108 = dma.vmem_to_hbm [thread:$0]  %s103_s13, 1024, %s199_s1, [#allocation5], %s172_s9, %s172_s9, %s173_s10  }
  0x20   :  { %169 = dma.done.wait [#allocation5], 1024  }
  0x21   :  { %170 = vsyncadd [#allocation5], 4294966272 }
  0x22   :  { %112 = vsyncpa [#allocation4], 1 }
  0x23   :  { %113 = vsyncpa [#allocation5], 1 }

</bundles_post_ra>
